<compile_context>
chip_gen: v7x
topology: tpu7x:2x2x1
jax: 0.10.0
libtpu: 0.0.40
codegen_flags: <defaults>
</compile_context>

<pallas_src>
import functools

import jax
import jax.numpy as jnp
from jax.experimental import pallas as pl
from jax.experimental.pallas import tpu as pltpu


def classifier_kernel(x_ref, w1_ref, b1_ref, w2_ref, b2_ref, o_ref, *, apply_softmax):
    # All math in f32 (required on v5e, which has no bf16 VPU/EUP).
    x = x_ref[...].astype(jnp.float32)

    if apply_softmax:  # static (trace-time) branch: only when output_size == 2
        m = jnp.max(x, axis=1, keepdims=True)
        e = jnp.exp(x - m)
        # Exact denominator: EUP/VPU have massive slack on this memory-bound kernel,
        # so exact division is free and keeps numerics tight.
        x = e / jnp.sum(e, axis=1, keepdims=True)

    # fc[0]: Linear(hidden -> cls_hidden) + ReLU (fc[1])
    h = jnp.dot(x, w1_ref[...].astype(jnp.float32),
                preferred_element_type=jnp.float32) + b1_ref[...].astype(jnp.float32)
    h = jnp.maximum(h, 0.0)

    # fc[2]: Linear(cls_hidden -> output_size). Unpadded output block: the masked
    # store is VMEM-side and fully hidden under the HBM DMA slack.
    out = jnp.dot(h, w2_ref[...].astype(jnp.float32),
                  preferred_element_type=jnp.float32) + b2_ref[...].astype(jnp.float32)
    o_ref[...] = out.astype(o_ref.dtype)


def classifier_forward(x, w1, b1, w2, b2, *, block_b=16384):
    """Forward pass of Classifier.

    x  : (B, hidden_size_3)  f32 or bf16
    w1 : (hidden_size_3, cls_hidden_size)   (already transposed to (in, out))
    b1 : (1, cls_hidden_size)
    w2 : (cls_hidden_size, output_size)
    b2 : (1, output_size)
    """
    B, hidden = x.shape
    cls_hidden, out_size = w2.shape
    apply_softmax = (out_size == 2)   # matches the PyTorch output_size == 2 guard

    # Sublane-packing multiple for the batch tile: 8 for f32, 16 for bf16, 32 for int8.
    itemsize = jnp.dtype(x.dtype).itemsize
    sub = 8 * max(1, 4 // itemsize)

    # Batch tile: large (per-grid-step overhead ~0.35us), but capped so that there are
    # at least two grid steps whenever possible (v7x megacore sharding via "parallel").
    half = -(-B // 2)                     # cdiv(B, 2)
    half_r = -(-half // sub) * sub        # rounded up to the packing multiple
    tb = max(sub, min(int(block_b), half_r))
    if tb >= B:
        tb = B                            # single full block: no overhang, legal block dim
    grid = (pl.cdiv(B, tb),)

    kernel = functools.partial(classifier_kernel, apply_softmax=apply_softmax)

    out_dtype = jnp.float32
    bytes_in = x.size * itemsize
    bytes_w = ((w1.size + b1.size) * jnp.dtype(w1.dtype).itemsize
               + (w2.size + b2.size) * jnp.dtype(w2.dtype).itemsize)
    bytes_out = B * out_size * jnp.dtype(out_dtype).itemsize
    cost = pl.CostEstimate(
        flops=2 * B * (hidden * cls_hidden + cls_hidden * out_size),
        transcendentals=B * hidden if apply_softmax else 0,
        bytes_accessed=bytes_in + bytes_w + bytes_out,
    )

    return pl.pallas_call(
        kernel,
        out_shape=jax.ShapeDtypeStruct((B, out_size), out_dtype),
        grid=grid,
        in_specs=[
            # x: tiled along the batch axis, pipelined/double-buffered by Pallas.
            pl.BlockSpec((tb, hidden), lambda i: (i, 0)),
            # Weights/biases: same block every grid step -> resident, no re-DMA.
            pl.BlockSpec((hidden, cls_hidden), lambda i: (0, 0)),
            pl.BlockSpec((1, cls_hidden), lambda i: (0, 0)),
            pl.BlockSpec((cls_hidden, out_size), lambda i: (0, 0)),
            pl.BlockSpec((1, out_size), lambda i: (0, 0)),
        ],
        # Unpadded output: last dim equals the full array dim (legal), writeback is
        # exactly B*out_size*4 bytes.
        out_specs=pl.BlockSpec((tb, out_size), lambda i: (i, 0)),
        compiler_params=pltpu.CompilerParams(
            dimension_semantics=("parallel",),   # megacore sharding on v7x
        ),
        cost_estimate=cost,
    )(x, w1, b1, w2, b2)


def init_params(key, hidden_size_3=16, cls_hidden_size=8, output_size=2):
    """PyTorch-style (uniform +-1/sqrt(fan_in)) init; weights stored as (in, out)."""
    k1, k2, k3, k4 = jax.random.split(key, 4)
    bound1 = 1.0 / jnp.sqrt(hidden_size_3)
    bound2 = 1.0 / jnp.sqrt(cls_hidden_size)
    w1 = jax.random.uniform(k1, (hidden_size_3, cls_hidden_size), jnp.float32,
                            -bound1, bound1)
    b1 = jax.random.uniform(k2, (1, cls_hidden_size), jnp.float32, -bound1, bound1)
    w2 = jax.random.uniform(k3, (cls_hidden_size, output_size), jnp.float32,
                            -bound2, bound2)
    b2 = jax.random.uniform(k4, (1, output_size), jnp.float32, -bound2, bound2)
    return w1, b1, w2, b2


def reference_forward(x, w1, b1, w2, b2):
    # Pure-JAX reference mirroring the PyTorch forward.
    xf = x.astype(jnp.float32)
    out_size = w2.shape[1]
    if out_size == 2:
        xf = jax.nn.softmax(xf, axis=1)
    h = jnp.maximum(xf @ w1 + b1, 0.0)
    return h @ w2 + b2


if __name__ == "__main__":
    hidden_size_3, cls_hidden_size, output_size = 16, 8, 2

    key = jax.random.PRNGKey(0)
    kx, kp, kx2, kx3 = jax.random.split(key, 4)
    w1, b1, w2, b2 = init_params(kp, hidden_size_3, cls_hidden_size, output_size)

    # 1) Small-batch f32 run (single full block, no overhang).
    batch = 8
    x = jax.random.normal(kx, (batch, hidden_size_3), jnp.float32)
    out = jax.block_until_ready(classifier_forward(x, w1, b1, w2, b2))
    ref = reference_forward(x, w1, b1, w2, b2)
    assert out.shape == (batch, output_size)
    assert not bool(jnp.any(jnp.isnan(out))), "NaN in f32 output"
    assert jnp.allclose(out, ref, atol=1e-4, rtol=1e-4), "f32 mismatch vs reference"

    # 2) B not a multiple of 8: exercises the last-block overhang path (garbage rows in the
    #    overhang flow through exp() but are row-local and never written back).
    batch_odd = 12
    x_odd = jax.random.normal(kx3, (batch_odd, hidden_size_3), jnp.float32)
    out_odd = jax.block_until_ready(classifier_forward(x_odd, w1, b1, w2, b2))
    ref_odd = reference_forward(x_odd, w1, b1, w2, b2)
    assert out_odd.shape == (batch_odd, output_size)
    assert not bool(jnp.any(jnp.isnan(out_odd))), "NaN leaked from overhang rows"
    assert jnp.allclose(out_odd, ref_odd, atol=1e-4, rtol=1e-4), "overhang mismatch"

    # 3) Larger batch with multiple grid steps (batch-tiled pipeline + megacore sharding),
    #    using bf16 activations from HBM (upcast to f32 inside the kernel).
    big_b = 512
    x_big = jax.random.normal(kx2, (big_b, hidden_size_3), jnp.float32)
    x_big_bf16 = x_big.astype(jnp.bfloat16)
    out_big = jax.block_until_ready(classifier_forward(x_big_bf16, w1, b1, w2, b2))
    ref_big = reference_forward(x_big_bf16, w1, b1, w2, b2)  # same bf16-cast input
    assert out_big.shape == (big_b, output_size)
    assert not bool(jnp.any(jnp.isnan(out_big))), "NaN in bf16-input output"
    assert jnp.allclose(out_big, ref_big, atol=1e-4, rtol=1e-4), "bf16 mismatch vs reference"

    print("KERNEL_OK")
</pallas_src>

<mosaic_0001>
module attributes {stable_mosaic.version = 11 : i64} {
  func.func @classifier_kernel(%arg0: i32, %arg1: memref<8x16xf32, #tpu.memory_space<vmem>>, %arg2: memref<16x8xf32, #tpu.memory_space<vmem>>, %arg3: memref<1x8xf32, #tpu.memory_space<vmem>>, %arg4: memref<8x2xf32, #tpu.memory_space<vmem>>, %arg5: memref<1x2xf32, #tpu.memory_space<vmem>>, %arg6: memref<8x2xf32, #tpu.memory_space<vmem>>) attributes {dimension_semantics = [#tpu.dimension_semantics<parallel>], iteration_bounds = array<i64: 1>, scalar_prefetch = 0 : i64, scratch_operands = 0 : i64, tpu.core_type = #tpu.core_type<tc>, window_params = [{transform_indices = @transform_0, window_bounds = array<i64: 8, 16>}, {pipeline_mode = #tpu.pipeline_mode<synchronous>, transform_indices = @transform_1, window_bounds = array<i64: 16, 8>}, {pipeline_mode = #tpu.pipeline_mode<synchronous>, transform_indices = @transform_2, window_bounds = array<i64: 1, 8>}, {pipeline_mode = #tpu.pipeline_mode<synchronous>, transform_indices = @transform_3, window_bounds = array<i64: 8, 2>}, {pipeline_mode = #tpu.pipeline_mode<synchronous>, transform_indices = @transform_4, window_bounds = array<i64: 1, 2>}, {transform_indices = @transform_5, window_bounds = array<i64: 8, 2>}]} {
    %c0 = arith.constant 0 : index
    %c0_0 = arith.constant 0 : index
    %0 = vector.load %arg1[%c0, %c0_0] : memref<8x16xf32, #tpu.memory_space<vmem>>, vector<8x16xf32>
    %cst = arith.constant dense<0xFF800000> : vector<8xf32>
    %1 = vector.multi_reduction <maximumf>, %0, %cst [1] : vector<8x16xf32> to vector<8xf32>
    %2 = vector.shape_cast %1 : vector<8xf32> to vector<8x1xf32>
    %3 = vector.broadcast %2 : vector<8x1xf32> to vector<8x16xf32>
    %4 = arith.subf %0, %3 : vector<8x16xf32>
    %5 = math.exp %4 : vector<8x16xf32>
    %cst_1 = arith.constant dense<0.000000e+00> : vector<8xf32>
    %6 = vector.multi_reduction <add>, %5, %cst_1 [1] : vector<8x16xf32> to vector<8xf32>
    %7 = vector.shape_cast %6 : vector<8xf32> to vector<8x1xf32>
    %8 = vector.broadcast %7 : vector<8x1xf32> to vector<8x16xf32>
    %9 = arith.divf %5, %8 : vector<8x16xf32>
    %c0_2 = arith.constant 0 : index
    %c0_3 = arith.constant 0 : index
    %10 = vector.load %arg2[%c0_2, %c0_3] : memref<16x8xf32, #tpu.memory_space<vmem>>, vector<16x8xf32>
    %cst_4 = arith.constant dense<0.000000e+00> : vector<8x8xf32>
    %11 = tpu.matmul %9, %10, %cst_4 {dimension_numbers = #tpu.dot_dimension_numbers<[1], [0], [0], [1], [0, 0, 1, 1], [], []>} : vector<8x16xf32>, vector<16x8xf32>, vector<8x8xf32> -> vector<8x8xf32>
    %c0_5 = arith.constant 0 : index
    %c0_6 = arith.constant 0 : index
    %12 = vector.load %arg3[%c0_5, %c0_6] : memref<1x8xf32, #tpu.memory_space<vmem>>, vector<1x8xf32>
    %13 = vector.broadcast %12 : vector<1x8xf32> to vector<8x8xf32>
    %14 = arith.addf %11, %13 : vector<8x8xf32>
    %cst_7 = arith.constant 0.000000e+00 : f32
    %15 = vector.broadcast %cst_7 : f32 to vector<8x8xf32>
    %16 = arith.maximumf %14, %15 : vector<8x8xf32>
    %c0_8 = arith.constant 0 : index
    %c0_9 = arith.constant 0 : index
    %17 = vector.load %arg4[%c0_8, %c0_9] : memref<8x2xf32, #tpu.memory_space<vmem>>, vector<8x2xf32>
    %cst_10 = arith.constant dense<0.000000e+00> : vector<8x2xf32>
    %18 = tpu.matmul %16, %17, %cst_10 {dimension_numbers = #tpu.dot_dimension_numbers<[1], [0], [0], [1], [0, 0, 1, 1], [], []>} : vector<8x8xf32>, vector<8x2xf32>, vector<8x2xf32> -> vector<8x2xf32>
    %c0_11 = arith.constant 0 : index
    %c0_12 = arith.constant 0 : index
    %19 = vector.load %arg5[%c0_11, %c0_12] : memref<1x2xf32, #tpu.memory_space<vmem>>, vector<1x2xf32>
    %20 = vector.broadcast %19 : vector<1x2xf32> to vector<8x2xf32>
    %21 = arith.addf %18, %20 : vector<8x2xf32>
    %c0_13 = arith.constant 0 : index
    %c0_14 = arith.constant 0 : index
    %22 = vector.load %arg6[%c0_13, %c0_14] : memref<8x2xf32, #tpu.memory_space<vmem>>, vector<8x2xf32>
    tpu.vector_store %arg6[%c0_13, %c0_14], %21 {strides = array<i32>} : memref<8x2xf32, #tpu.memory_space<vmem>>, vector<8x2xf32>,
    return
  }
  func.func @transform_0(%arg0: i32) -> (i32, i32) {
    %c0_i32 = arith.constant 0 : i32
    %c0_i32_0 = arith.constant 0 : i32
    return %arg0, %c0_i32 : i32, i32
  }
  func.func @transform_1(%arg0: i32) -> (i32, i32) {
    %c0_i32 = arith.constant 0 : i32
    %c0_i32_0 = arith.constant 0 : i32
    %c0_i32_1 = arith.constant 0 : i32
    return %c0_i32, %c0_i32_0 : i32, i32
  }
  func.func @transform_2(%arg0: i32) -> (i32, i32) {
    %c0_i32 = arith.constant 0 : i32
    %c0_i32_0 = arith.constant 0 : i32
    %c0_i32_1 = arith.constant 0 : i32
    return %c0_i32, %c0_i32_0 : i32, i32
  }
  func.func @transform_3(%arg0: i32) -> (i32, i32) {
    %c0_i32 = arith.constant 0 : i32
    %c0_i32_0 = arith.constant 0 : i32
    %c0_i32_1 = arith.constant 0 : i32
    return %c0_i32, %c0_i32_0 : i32, i32
  }
  func.func @transform_4(%arg0: i32) -> (i32, i32) {
    %c0_i32 = arith.constant 0 : i32
    %c0_i32_0 = arith.constant 0 : i32
    %c0_i32_1 = arith.constant 0 : i32
    return %c0_i32, %c0_i32_0 : i32, i32
  }
  func.func @transform_5(%arg0: i32) -> (i32, i32) {
    %c0_i32 = arith.constant 0 : i32
    %c0_i32_0 = arith.constant 0 : i32
    return %arg0, %c0_i32 : i32, i32
  }
}

</mosaic_0001>

<bundles_post_ra>
// kernel: tpu_custom_call.1
= control target key start
LH: loop header
LB: loop body
LE: loop exit
PB: predicated region body
PF: predicated region fallthrough
CT: control target
= control target key end

     0   :  { %vm21_vm0 = vcmask 130048   ;;  %v235_v7 = vmov 0.0|0.0   ;;  %vm236_vm1 = vmmov 0   ;;  %v237_v10 = vmov 0.0   ;;  %s292_s0 = inlined_call_operand.vmem [shape: f32[8,16], index: 0, kind: input, shape index: {}]   ;;  %s293_s1 = inlined_call_operand.vmem [shape: f32[16,8], index: 1, kind: input, shape index: {}]   ;;  %s294_s3 = inlined_call_operand.vmem [shape: f32[8,2], index: 3, kind: input, shape index: {}]   ;;  %s295_s2 = inlined_call_operand.vmem [shape: f32[1,8], index: 2, kind: input, shape index: {}]   ;;  %s296_s4 = inlined_call_operand.vmem [shape: f32[1,2], index: 4, kind: input, shape index: {}]   ;;  %s297_s5 = inlined_call_operand.vmem [shape: f32[8,2], index: 5, kind: output, shape index: {}]  }
   0x1   :  { %v20_v0 = vld [vmem:[%s292_s0] sm:$0xff]  ;;  %225 = vmatprep.subr.bf16.mxu0 %v235_v7  ;;  %v34_v9 = vld [vmem:[%s293_s1 + $0x8] sm:$0xff]  ;;  %217 = vmatprep.mubr.msk.f32.mxu0 %vm236_vm1, %v237_v10  ;;  %vm124_vm2 = vcmask 64512   ;;  %vm198_vm3 = vcmask 15360  }
   0x2   :  { %v22_v1 = vsel %vm21_vm0, %v20_v0, -inf  ;;  %v33_v8 = vld [vmem:[%s293_s1] sm:$0xff]  ;;  %220 = vmatprep.subr.mxu1 %v237_v10  ;;  %222 = vmatprep.mubr.msk.f32.mxu1 %vm236_vm1, %v237_v10 }
   0x3   :  { %23 = vmax.xlane.f32.xlu0 %v22_v1  ;;  %v226_v11 = vpack.c.bf16 %v34_v9, %v33_v8  ;;  %v116_v15 = vld [vmem:[%s294_s3] sm:$0xff] }
   0x4   :  { %221 = vmatpush3.msra.mxu1 %v116_v15  ;;  %v204_v16 = vld [vmem:[%s295_s2] ss:$0 sm:$0xff] }
   0x5   :  { %227 = vmatpush3.bf16.msra.mxu0 %v226_v11  ;;  %v206_v21 = vld [vmem:[%s296_s4] ss:$0 sm:$0xff] }
  0x90   :  { %v24_v2 = vpop.xlane.xlu0 %23 }
  0x91   :  { %v25_v3 = vsub.f32 %v20_v0, %v24_v2 }
  0x93   :  { %v26_v4 = vmul.f32 1.442695, %v25_v3 }
  0x95   :  { %231 = vpow2.f32 %v26_v4 }
  0x9f   :  { %v232_v5 = vpop.eup %231 }
  0xa0   :  { %v28_v6 = vsel %vm21_vm0, %v232_v5, 0.0 }
  0xa1   :  { %29 = vadd.xlane.f32.xlu0 %v28_v6 }
 0x12e   :  { %v30_v12 = vpop.xlane.xlu0 %29 }
 0x12f   :  { %233 = vrcp.f32 %v30_v12 }
 0x139   :  { %v234_v13 = vpop.eup %233 }
 0x13a   :  { %v32_v14 = vmul.f32 %v234_v13, %v232_v5 }
 0x13c   :  { %218 = vmatmul.mubr.msk.f32.vlgmr.msra.gmra.mrb[0].mxu0 %vm21_vm0, %v32_v14 }
 0x20f   :  { %v111_v17 = vpop.f32.mrb[0].mxu0 }
 0x210   :  { %v112_v18 = vadd.f32 %v204_v16, %v111_v17  ;;  %v219_v19 = vpop.f32.mrb[1].mxu0 }
 0x212   :  { %v115_v20 = vmax.f32 %v112_v18, 0.0 }
 0x214   :  { %223 = vmatmul.mubr.msk.f32.vlgmr.msra.gmra.mrb[0].mxu1 %vm124_vm2, %v115_v20 }
 0x2e7   :  { %v194_v22 = vpop.f32.mrb[0].mxu1 }
 0x2e8   :  { %v195_v23 = vadd.f32 %v206_v21, %v194_v22  ;;  %v224_v24 = vpop.f32.mrb[1].mxu1 }
 0x2ea   :  { %199 = vst.msk [vmem:[%s297_s5] sm:$0xff] %vm198_vm3, %v195_v23 }

</bundles_post_ra>
